<compile_context>
chip_gen: v7x
topology: tpu7x:2x2x1
jax: 0.10.0
libtpu: 0.0.40
codegen_flags: <defaults>
</compile_context>

<pallas_src>
import jax
import jax.numpy as jnp
from jax.experimental import pallas as pl
from jax.experimental.pallas import tpu as pltpu


def _round_up(a, m):
    return (a + m - 1) // m * m


def prepare_weights(params):
    """One-time parameter preparation (NOT on the per-call path).

    Folds the emb layer into the LSTM input projection and packs all operands
    into one lane-dense (ROWS, LANES) f32 slab:
        rows [0,        Dp)        : w_comb = w_emb^T @ w_ih^T   (Dp = D rounded to 8)
        rows [Dp,       Dp+8)      : b_comb = b_emb @ w_ih^T + (b_ih + b_hh)  (row 0)
        rows [Dp+8,     Dp+8+Hp)   : w_hh^T                     (Hp = H rounded to 8)
        rows [Dp+8+Hp,  Dp+8+2Hp)  : w_out^T  (lane-padded)
        rows [Dp+8+2Hp, Dp+16+2Hp) : b_out    (row 0, lane-padded)
    Gate column order is PyTorch's i,f,g,o and is preserved by the fold.
    """
    D, _E = params["w_emb_T"].shape
    H = params["w_hh_T"].shape[0]
    G = 4 * H
    LANES = _round_up(max(G, D, 128), 128)
    Dp = _round_up(D, 8)
    Hp = _round_up(H, 8)

    w_comb = params["w_emb_T"] @ params["w_ih_T"]                    # (D, 4H)
    b_comb = params["b_emb"] @ params["w_ih_T"] + params["bias"]     # (1, 4H)

    def pad_to(a, rows, lanes=LANES):
        r, l = a.shape
        return jnp.pad(a, ((0, rows - r), (0, lanes - l)))

    layout = [("w_comb", pad_to(w_comb, Dp)),
              ("b_comb", pad_to(b_comb, 8)),
              ("w_hh",   pad_to(params["w_hh_T"], Hp)),
              ("w_out",  pad_to(params["w_out_T"], Hp)),
              ("b_out",  pad_to(params["b_out"], 8))]
    w_slab = jnp.concatenate([seg for _, seg in layout], axis=0)

    offsets, o = {}, 0
    for name, seg in layout:
        offsets[name] = o
        o += seg.shape[0]
    meta = dict(D=D, H=H, Dp=Dp, Hp=Hp, LANES=LANES, offsets=offsets, rows=o)
    return w_slab, meta


def build_forward(meta):
    """Returns a jitted forward(x, w_slab) -> (out, (h_n, c_n))."""
    D, H = meta["D"], meta["H"]
    Dp, LANES = meta["Dp"], meta["LANES"]
    offs = meta["offsets"]
    G = 4 * H

    @jax.jit
    def forward(x, w_slab):
        B, T, Din = x.shape
        assert Din == D
        Bp = _round_up(B, 8)                              # pad batch to 8 sublanes
        PACK = max(128, _round_up(D + 2 * H, 128))        # lane-dense output width

        def kernel(x_ref, w_ref, packed_ref):
            """Whole forward pass in VMEM (tiny model, no tiling needed).

            x_ref     : (T*Bp, Dp)   time-major, batch+feature padded input
            w_ref     : (ROWS, LANES) packed weight slab (see prepare_weights)
            packed_ref: (Bp, PACK)   [ out(D) | h_T(H) | c_T(H) | pad ]
            """
            # Static, 8-sublane-aligned slab slices (no hidden VMEM copies).
            wc = w_ref[offs["w_comb"]:offs["w_comb"] + Dp, :G]     # (Dp, 4H)
            bc = w_ref[offs["b_comb"]:offs["b_comb"] + 1, :G]      # (1, 4H)
            whh = w_ref[offs["w_hh"]:offs["w_hh"] + H, :G]         # (H, 4H)
            wout = w_ref[offs["w_out"]:offs["w_out"] + H, :]       # (H, LANES)
            bout = w_ref[offs["b_out"]:offs["b_out"] + 1, :]       # (1, LANES)

            # All timesteps' input-side gate contribution in ONE MXU launch;
            # the (1, 4H) bias broadcast happens exactly once here.
            gates_x = (jnp.dot(x_ref[...], wc,
                               preferred_element_type=jnp.float32) + bc)

            h = jnp.zeros((Bp, H), jnp.float32)   # h0 = zeros (init_hidden)
            c = jnp.zeros((Bp, H), jnp.float32)   # c0 = zeros

            # Small static T -> unrolled; only h @ whh is on the serial chain.
            for t in range(T):
                gates = gates_x[t * Bp:(t + 1) * Bp, :] + jnp.dot(
                    h, whh, preferred_element_type=jnp.float32)    # (Bp, 4H)
                # Full 128-lane transcendentals (EUP slot), slice afterwards.
                sig = jax.nn.sigmoid(gates)
                tnh = jnp.tanh(gates)
                i_g = sig[:, 0 * H:1 * H]
                f_g = sig[:, 1 * H:2 * H]
                g_g = tnh[:, 2 * H:3 * H]
                o_g = sig[:, 3 * H:4 * H]
                c = f_g * c + i_g * g_g
                h = o_g * jnp.tanh(c)

            outp = (jnp.dot(h, wout, preferred_element_type=jnp.float32)
                    + bout)                        # (Bp, LANES); lanes >= D are 0

            pieces = [outp[:, :D], h, c]
            pad = PACK - (D + 2 * H)
            if pad > 0:
                pieces.append(jnp.zeros((Bp, pad), jnp.float32))
            packed_ref[...] = jnp.concatenate(pieces, axis=-1)  # single store

        # Time-major, batch-padded, feature-padded, flattened so per-step
        # slices of gates_x are sublane-aligned.  (Stays inside this jit so it
        # fuses with the pallas_call into one dispatch.)
        xp = jnp.transpose(x, (1, 0, 2))                  # (T, B, D)
        xp = jnp.pad(xp, ((0, 0), (0, Bp - B), (0, Dp - D)))
        x2d = xp.reshape(T * Bp, Dp)

        vmem = pl.BlockSpec(memory_space=pltpu.MemorySpace.VMEM)
        packed = pl.pallas_call(
            kernel,
            out_shape=jax.ShapeDtypeStruct((Bp, PACK), jnp.float32),
            in_specs=[vmem, vmem],
            out_specs=vmem,
        )(x2d, w_slab)

        out = packed[:B, :D]
        hn = packed[:B, D:D + H].reshape(1, B, H)   # PyTorch: (num_layers, B, H)
        cn = packed[:B, D + H:D + 2 * H].reshape(1, B, H)
        return out, (hn, cn)

    return forward


def init_params(key, input_dim, input_size, rnn_unit):
    """Deterministic synthetic parameters with PyTorch-equivalent shapes."""
    D, E, H = input_dim, input_size, rnn_unit
    keys = jax.random.split(key, 8)
    s = 0.1
    return {
        "w_emb_T": s * jax.random.normal(keys[0], (D, E), jnp.float32),      # emb.weight^T
        "b_emb":   s * jax.random.normal(keys[1], (1, E), jnp.float32),      # emb.bias
        "w_ih_T":  s * jax.random.normal(keys[2], (E, 4 * H), jnp.float32),  # weight_ih_l0^T
        "w_hh_T":  s * jax.random.normal(keys[3], (H, 4 * H), jnp.float32),  # weight_hh_l0^T
        "bias":    s * jax.random.normal(keys[4], (1, 4 * H), jnp.float32),  # b_ih + b_hh
        "w_out_T": s * jax.random.normal(keys[5], (H, D), jnp.float32),      # out.weight^T
        "b_out":   s * jax.random.normal(keys[6], (1, D), jnp.float32),      # out.bias
    }


def reference_forward(x, params):
    """Pure-jnp reference of the ORIGINAL (un-folded) forward pass."""
    B, T, D = x.shape
    H = params["w_hh_T"].shape[0]
    h = jnp.zeros((B, H), jnp.float32)
    c = jnp.zeros((B, H), jnp.float32)
    for t in range(T):
        emb = x[:, t, :] @ params["w_emb_T"] + params["b_emb"]
        gates = emb @ params["w_ih_T"] + h @ params["w_hh_T"] + params["bias"]
        i_g = jax.nn.sigmoid(gates[:, 0 * H:1 * H])
        f_g = jax.nn.sigmoid(gates[:, 1 * H:2 * H])
        g_g = jnp.tanh(gates[:, 2 * H:3 * H])
        o_g = jax.nn.sigmoid(gates[:, 3 * H:4 * H])
        c = f_g * c + i_g * g_g
        h = o_g * jnp.tanh(c)
    out = h @ params["w_out_T"] + params["b_out"]
    return out, (h.reshape(1, B, H), c.reshape(1, B, H))


if __name__ == "__main__":
    # Small shapes consistent with the module: input_dim=4, input_size=16, rnn_unit=32.
    B, T, D, E, H = 2, 8, 4, 16, 32

    key = jax.random.PRNGKey(0)
    kx, kp = jax.random.split(key)
    x = jax.random.normal(kx, (B, T, D), jnp.float32)
    params = init_params(kp, D, E, H)

    # One-time: fold emb into the input projection and pack the weight slab.
    w_slab, meta = prepare_weights(params)
    w_slab = jax.block_until_ready(w_slab)
    forward = build_forward(meta)

    out, (hn, cn) = forward(x, w_slab)
    out = jax.block_until_ready(out)
    hn = jax.block_until_ready(hn)
    cn = jax.block_until_ready(cn)

    ref_out, (ref_hn, ref_cn) = reference_forward(x, params)
    assert out.shape == (B, D) and hn.shape == (1, B, H) and cn.shape == (1, B, H)
    assert jnp.allclose(out, ref_out, atol=1e-5, rtol=1e-5)
    assert jnp.allclose(hn, ref_hn, atol=1e-5, rtol=1e-5)
    assert jnp.allclose(cn, ref_cn, atol=1e-5, rtol=1e-5)

    print("KERNEL_OK")
</pallas_src>

<mosaic_0001>
module attributes {stable_mosaic.version = 11 : i64} {
  func.func @kernel(%arg0: memref<64x8xf32, #tpu.memory_space<vmem>>, %arg1: memref<88x128xf32, #tpu.memory_space<vmem>>, %arg2: memref<8x128xf32, #tpu.memory_space<vmem>>) attributes {dimension_semantics = [], scalar_prefetch = 0 : i64, scratch_operands = 0 : i64, tpu.core_type = #tpu.core_type<tc>} {
    %c0 = arith.constant 0 : index
    %c0_0 = arith.constant 0 : index
    %0 = vector.load %arg1[%c0, %c0_0] : memref<88x128xf32, #tpu.memory_space<vmem>>, vector<8x128xf32>
    %c8 = arith.constant 8 : index
    %c0_1 = arith.constant 0 : index
    %1 = vector.load %arg1[%c8, %c0_1] : memref<88x128xf32, #tpu.memory_space<vmem>>, vector<1x128xf32>
    %c16 = arith.constant 16 : index
    %c0_2 = arith.constant 0 : index
    %2 = vector.load %arg1[%c16, %c0_2] : memref<88x128xf32, #tpu.memory_space<vmem>>, vector<32x128xf32>
    %c48 = arith.constant 48 : index
    %c0_3 = arith.constant 0 : index
    %3 = vector.load %arg1[%c48, %c0_3] : memref<88x128xf32, #tpu.memory_space<vmem>>, vector<32x128xf32>
    %c80 = arith.constant 80 : index
    %c0_4 = arith.constant 0 : index
    %4 = vector.load %arg1[%c80, %c0_4] : memref<88x128xf32, #tpu.memory_space<vmem>>, vector<1x128xf32>
    %c0_5 = arith.constant 0 : index
    %c0_6 = arith.constant 0 : index
    %5 = vector.load %arg0[%c0_5, %c0_6] : memref<64x8xf32, #tpu.memory_space<vmem>>, vector<64x8xf32>
    %cst = arith.constant dense<0.000000e+00> : vector<64x128xf32>
    %6 = tpu.matmul %5, %0, %cst {dimension_numbers = #tpu.dot_dimension_numbers<[1], [0], [0], [1], [0, 0, 1, 1], [], []>} : vector<64x8xf32>, vector<8x128xf32>, vector<64x128xf32> -> vector<64x128xf32>
    %7 = vector.broadcast %1 : vector<1x128xf32> to vector<64x128xf32>
    %8 = arith.addf %6, %7 : vector<64x128xf32>
    %cst_7 = arith.constant 0.000000e+00 : f32
    %9 = vector.broadcast %cst_7 : f32 to vector<8x32xf32>
    %cst_8 = arith.constant 0.000000e+00 : f32
    %10 = vector.broadcast %cst_8 : f32 to vector<8x32xf32>
    %11 = vector.extract_strided_slice %8 {offsets = [0, 0], sizes = [8, 128], strides = [1, 1]} : vector<64x128xf32> to vector<8x128xf32>
    %cst_9 = arith.constant dense<0.000000e+00> : vector<8x128xf32>
    %12 = tpu.matmul %9, %2, %cst_9 {dimension_numbers = #tpu.dot_dimension_numbers<[1], [0], [0], [1], [0, 0, 1, 1], [], []>} : vector<8x32xf32>, vector<32x128xf32>, vector<8x128xf32> -> vector<8x128xf32>
    %13 = arith.addf %11, %12 : vector<8x128xf32>
    %14 = arith.negf %13 : vector<8x128xf32>
    %15 = math.exp %14 : vector<8x128xf32>
    %cst_10 = arith.constant 1.000000e+00 : f32
    %16 = vector.broadcast %cst_10 : f32 to vector<8x128xf32>
    %17 = arith.addf %16, %15 : vector<8x128xf32>
    %18 = arith.divf %16, %17 : vector<8x128xf32>
    %19 = math.tanh %13 : vector<8x128xf32>
    %20 = vector.extract_strided_slice %18 {offsets = [0, 0], sizes = [8, 32], strides = [1, 1]} : vector<8x128xf32> to vector<8x32xf32>
    %21 = vector.extract_strided_slice %18 {offsets = [0, 32], sizes = [8, 32], strides = [1, 1]} : vector<8x128xf32> to vector<8x32xf32>
    %22 = vector.extract_strided_slice %19 {offsets = [0, 64], sizes = [8, 32], strides = [1, 1]} : vector<8x128xf32> to vector<8x32xf32>
    %23 = vector.extract_strided_slice %18 {offsets = [0, 96], sizes = [8, 32], strides = [1, 1]} : vector<8x128xf32> to vector<8x32xf32>
    %24 = arith.mulf %21, %10 : vector<8x32xf32>
    %25 = arith.mulf %20, %22 : vector<8x32xf32>
    %26 = arith.addf %24, %25 : vector<8x32xf32>
    %27 = math.tanh %26 : vector<8x32xf32>
    %28 = arith.mulf %23, %27 : vector<8x32xf32>
    %29 = vector.extract_strided_slice %8 {offsets = [8, 0], sizes = [8, 128], strides = [1, 1]} : vector<64x128xf32> to vector<8x128xf32>
    %cst_11 = arith.constant dense<0.000000e+00> : vector<8x128xf32>
    %30 = tpu.matmul %28, %2, %cst_11 {dimension_numbers = #tpu.dot_dimension_numbers<[1], [0], [0], [1], [0, 0, 1, 1], [], []>} : vector<8x32xf32>, vector<32x128xf32>, vector<8x128xf32> -> vector<8x128xf32>
    %31 = arith.addf %29, %30 : vector<8x128xf32>
    %32 = arith.negf %31 : vector<8x128xf32>
    %33 = math.exp %32 : vector<8x128xf32>
    %cst_12 = arith.constant 1.000000e+00 : f32
    %34 = vector.broadcast %cst_12 : f32 to vector<8x128xf32>
    %35 = arith.addf %34, %33 : vector<8x128xf32>
    %36 = arith.divf %34, %35 : vector<8x128xf32>
    %37 = math.tanh %31 : vector<8x128xf32>
    %38 = vector.extract_strided_slice %36 {offsets = [0, 0], sizes = [8, 32], strides = [1, 1]} : vector<8x128xf32> to vector<8x32xf32>
    %39 = vector.extract_strided_slice %36 {offsets = [0, 32], sizes = [8, 32], strides = [1, 1]} : vector<8x128xf32> to vector<8x32xf32>
    %40 = vector.extract_strided_slice %37 {offsets = [0, 64], sizes = [8, 32], strides = [1, 1]} : vector<8x128xf32> to vector<8x32xf32>
    %41 = vector.extract_strided_slice %36 {offsets = [0, 96], sizes = [8, 32], strides = [1, 1]} : vector<8x128xf32> to vector<8x32xf32>
    %42 = arith.mulf %39, %26 : vector<8x32xf32>
    %43 = arith.mulf %38, %40 : vector<8x32xf32>
    %44 = arith.addf %42, %43 : vector<8x32xf32>
    %45 = math.tanh %44 : vector<8x32xf32>
    %46 = arith.mulf %41, %45 : vector<8x32xf32>
    %47 = vector.extract_strided_slice %8 {offsets = [16, 0], sizes = [8, 128], strides = [1, 1]} : vector<64x128xf32> to vector<8x128xf32>
    %cst_13 = arith.constant dense<0.000000e+00> : vector<8x128xf32>
    %48 = tpu.matmul %46, %2, %cst_13 {dimension_numbers = #tpu.dot_dimension_numbers<[1], [0], [0], [1], [0, 0, 1, 1], [], []>} : vector<8x32xf32>, vector<32x128xf32>, vector<8x128xf32> -> vector<8x128xf32>
    %49 = arith.addf %47, %48 : vector<8x128xf32>
    %50 = arith.negf %49 : vector<8x128xf32>
    %51 = math.exp %50 : vector<8x128xf32>
    %cst_14 = arith.constant 1.000000e+00 : f32
    %52 = vector.broadcast %cst_14 : f32 to vector<8x128xf32>
    %53 = arith.addf %52, %51 : vector<8x128xf32>
    %54 = arith.divf %52, %53 : vector<8x128xf32>
    %55 = math.tanh %49 : vector<8x128xf32>
    %56 = vector.extract_strided_slice %54 {offsets = [0, 0], sizes = [8, 32], strides = [1, 1]} : vector<8x128xf32> to vector<8x32xf32>
    %57 = vector.extract_strided_slice %54 {offsets = [0, 32], sizes = [8, 32], strides = [1, 1]} : vector<8x128xf32> to vector<8x32xf32>
    %58 = vector.extract_strided_slice %55 {offsets = [0, 64], sizes = [8, 32], strides = [1, 1]} : vector<8x128xf32> to vector<8x32xf32>
    %59 = vector.extract_strided_slice %54 {offsets = [0, 96], sizes = [8, 32], strides = [1, 1]} : vector<8x128xf32> to vector<8x32xf32>
    %60 = arith.mulf %57, %44 : vector<8x32xf32>
    %61 = arith.mulf %56, %58 : vector<8x32xf32>
    %62 = arith.addf %60, %61 : vector<8x32xf32>
    %63 = math.tanh %62 : vector<8x32xf32>
    %64 = arith.mulf %59, %63 : vector<8x32xf32>
    %65 = vector.extract_strided_slice %8 {offsets = [24, 0], sizes = [8, 128], strides = [1, 1]} : vector<64x128xf32> to vector<8x128xf32>
    %cst_15 = arith.constant dense<0.000000e+00> : vector<8x128xf32>
    %66 = tpu.matmul %64, %2, %cst_15 {dimension_numbers = #tpu.dot_dimension_numbers<[1], [0], [0], [1], [0, 0, 1, 1], [], []>} : vector<8x32xf32>, vector<32x128xf32>, vector<8x128xf32> -> vector<8x128xf32>
    %67 = arith.addf %65, %66 : vector<8x128xf32>
    %68 = arith.negf %67 : vector<8x128xf32>
    %69 = math.exp %68 : vector<8x128xf32>
    %cst_16 = arith.constant 1.000000e+00 : f32
    %70 = vector.broadcast %cst_16 : f32 to vector<8x128xf32>
    %71 = arith.addf %70, %69 : vector<8x128xf32>
    %72 = arith.divf %70, %71 : vector<8x128xf32>
    %73 = math.tanh %67 : vector<8x128xf32>
    %74 = vector.extract_strided_slice %72 {offsets = [0, 0], sizes = [8, 32], strides = [1, 1]} : vector<8x128xf32> to vector<8x32xf32>
    %75 = vector.extract_strided_slice %72 {offsets = [0, 32], sizes = [8, 32], strides = [1, 1]} : vector<8x128xf32> to vector<8x32xf32>
    %76 = vector.extract_strided_slice %73 {offsets = [0, 64], sizes = [8, 32], strides = [1, 1]} : vector<8x128xf32> to vector<8x32xf32>
    %77 = vector.extract_strided_slice %72 {offsets = [0, 96], sizes = [8, 32], strides = [1, 1]} : vector<8x128xf32> to vector<8x32xf32>
    %78 = arith.mulf %75, %62 : vector<8x32xf32>
    %79 = arith.mulf %74, %76 : vector<8x32xf32>
    %80 = arith.addf %78, %79 : vector<8x32xf32>
    %81 = math.tanh %80 : vector<8x32xf32>
    %82 = arith.mulf %77, %81 : vector<8x32xf32>
    %83 = vector.extract_strided_slice %8 {offsets = [32, 0], sizes = [8, 128], strides = [1, 1]} : vector<64x128xf32> to vector<8x128xf32>
    %cst_17 = arith.constant dense<0.000000e+00> : vector<8x128xf32>
    %84 = tpu.matmul %82, %2, %cst_17 {dimension_numbers = #tpu.dot_dimension_numbers<[1], [0], [0], [1], [0, 0, 1, 1], [], []>} : vector<8x32xf32>, vector<32x128xf32>, vector<8x128xf32> -> vector<8x128xf32>
    %85 = arith.addf %83, %84 : vector<8x128xf32>
    %86 = arith.negf %85 : vector<8x128xf32>
    %87 = math.exp %86 : vector<8x128xf32>
    %cst_18 = arith.constant 1.000000e+00 : f32
    %88 = vector.broadcast %cst_18 : f32 to vector<8x128xf32>
    %89 = arith.addf %88, %87 : vector<8x128xf32>
    %90 = arith.divf %88, %89 : vector<8x128xf32>
    %91 = math.tanh %85 : vector<8x128xf32>
    %92 = vector.extract_strided_slice %90 {offsets = [0, 0], sizes = [8, 32], strides = [1, 1]} : vector<8x128xf32> to vector<8x32xf32>
    %93 = vector.extract_strided_slice %90 {offsets = [0, 32], sizes = [8, 32], strides = [1, 1]} : vector<8x128xf32> to vector<8x32xf32>
    %94 = vector.extract_strided_slice %91 {offsets = [0, 64], sizes = [8, 32], strides = [1, 1]} : vector<8x128xf32> to vector<8x32xf32>
    %95 = vector.extract_strided_slice %90 {offsets = [0, 96], sizes = [8, 32], strides = [1, 1]} : vector<8x128xf32> to vector<8x32xf32>
    %96 = arith.mulf %93, %80 : vector<8x32xf32>
    %97 = arith.mulf %92, %94 : vector<8x32xf32>
    %98 = arith.addf %96, %97 : vector<8x32xf32>
    %99 = math.tanh %98 : vector<8x32xf32>
    %100 = arith.mulf %95, %99 : vector<8x32xf32>
    %101 = vector.extract_strided_slice %8 {offsets = [40, 0], sizes = [8, 128], strides = [1, 1]} : vector<64x128xf32> to vector<8x128xf32>
    %cst_19 = arith.constant dense<0.000000e+00> : vector<8x128xf32>
    %102 = tpu.matmul %100, %2, %cst_19 {dimension_numbers = #tpu.dot_dimension_numbers<[1], [0], [0], [1], [0, 0, 1, 1], [], []>} : vector<8x32xf32>, vector<32x128xf32>, vector<8x128xf32> -> vector<8x128xf32>
    %103 = arith.addf %101, %102 : vector<8x128xf32>
    %104 = arith.negf %103 : vector<8x128xf32>
    %105 = math.exp %104 : vector<8x128xf32>
    %cst_20 = arith.constant 1.000000e+00 : f32
    %106 = vector.broadcast %cst_20 : f32 to vector<8x128xf32>
    %107 = arith.addf %106, %105 : vector<8x128xf32>
    %108 = arith.divf %106, %107 : vector<8x128xf32>
    %109 = math.tanh %103 : vector<8x128xf32>
    %110 = vector.extract_strided_slice %108 {offsets = [0, 0], sizes = [8, 32], strides = [1, 1]} : vector<8x128xf32> to vector<8x32xf32>
    %111 = vector.extract_strided_slice %108 {offsets = [0, 32], sizes = [8, 32], strides = [1, 1]} : vector<8x128xf32> to vector<8x32xf32>
    %112 = vector.extract_strided_slice %109 {offsets = [0, 64], sizes = [8, 32], strides = [1, 1]} : vector<8x128xf32> to vector<8x32xf32>
    %113 = vector.extract_strided_slice %108 {offsets = [0, 96], sizes = [8, 32], strides = [1, 1]} : vector<8x128xf32> to vector<8x32xf32>
    %114 = arith.mulf %111, %98 : vector<8x32xf32>
    %115 = arith.mulf %110, %112 : vector<8x32xf32>
    %116 = arith.addf %114, %115 : vector<8x32xf32>
    %117 = math.tanh %116 : vector<8x32xf32>
    %118 = arith.mulf %113, %117 : vector<8x32xf32>
    %119 = vector.extract_strided_slice %8 {offsets = [48, 0], sizes = [8, 128], strides = [1, 1]} : vector<64x128xf32> to vector<8x128xf32>
    %cst_21 = arith.constant dense<0.000000e+00> : vector<8x128xf32>
    %120 = tpu.matmul %118, %2, %cst_21 {dimension_numbers = #tpu.dot_dimension_numbers<[1], [0], [0], [1], [0, 0, 1, 1], [], []>} : vector<8x32xf32>, vector<32x128xf32>, vector<8x128xf32> -> vector<8x128xf32>
    %121 = arith.addf %119, %120 : vector<8x128xf32>
    %122 = arith.negf %121 : vector<8x128xf32>
    %123 = math.exp %122 : vector<8x128xf32>
    %cst_22 = arith.constant 1.000000e+00 : f32
    %124 = vector.broadcast %cst_22 : f32 to vector<8x128xf32>
    %125 = arith.addf %124, %123 : vector<8x128xf32>
    %126 = arith.divf %124, %125 : vector<8x128xf32>
    %127 = math.tanh %121 : vector<8x128xf32>
    %128 = vector.extract_strided_slice %126 {offsets = [0, 0], sizes = [8, 32], strides = [1, 1]} : vector<8x128xf32> to vector<8x32xf32>
    %129 = vector.extract_strided_slice %126 {offsets = [0, 32], sizes = [8, 32], strides = [1, 1]} : vector<8x128xf32> to vector<8x32xf32>
    %130 = vector.extract_strided_slice %127 {offsets = [0, 64], sizes = [8, 32], strides = [1, 1]} : vector<8x128xf32> to vector<8x32xf32>
    %131 = vector.extract_strided_slice %126 {offsets = [0, 96], sizes = [8, 32], strides = [1, 1]} : vector<8x128xf32> to vector<8x32xf32>
    %132 = arith.mulf %129, %116 : vector<8x32xf32>
    %133 = arith.mulf %128, %130 : vector<8x32xf32>
    %134 = arith.addf %132, %133 : vector<8x32xf32>
    %135 = math.tanh %134 : vector<8x32xf32>
    %136 = arith.mulf %131, %135 : vector<8x32xf32>
    %137 = vector.extract_strided_slice %8 {offsets = [56, 0], sizes = [8, 128], strides = [1, 1]} : vector<64x128xf32> to vector<8x128xf32>
    %cst_23 = arith.constant dense<0.000000e+00> : vector<8x128xf32>
    %138 = tpu.matmul %136, %2, %cst_23 {dimension_numbers = #tpu.dot_dimension_numbers<[1], [0], [0], [1], [0, 0, 1, 1], [], []>} : vector<8x32xf32>, vector<32x128xf32>, vector<8x128xf32> -> vector<8x128xf32>
    %139 = arith.addf %137, %138 : vector<8x128xf32>
    %140 = arith.negf %139 : vector<8x128xf32>
    %141 = math.exp %140 : vector<8x128xf32>
    %cst_24 = arith.constant 1.000000e+00 : f32
    %142 = vector.broadcast %cst_24 : f32 to vector<8x128xf32>
    %143 = arith.addf %142, %141 : vector<8x128xf32>
    %144 = arith.divf %142, %143 : vector<8x128xf32>
    %145 = math.tanh %139 : vector<8x128xf32>
    %146 = vector.extract_strided_slice %144 {offsets = [0, 0], sizes = [8, 32], strides = [1, 1]} : vector<8x128xf32> to vector<8x32xf32>
    %147 = vector.extract_strided_slice %144 {offsets = [0, 32], sizes = [8, 32], strides = [1, 1]} : vector<8x128xf32> to vector<8x32xf32>
    %148 = vector.extract_strided_slice %145 {offsets = [0, 64], sizes = [8, 32], strides = [1, 1]} : vector<8x128xf32> to vector<8x32xf32>
    %149 = vector.extract_strided_slice %144 {offsets = [0, 96], sizes = [8, 32], strides = [1, 1]} : vector<8x128xf32> to vector<8x32xf32>
    %150 = arith.mulf %147, %134 : vector<8x32xf32>
    %151 = arith.mulf %146, %148 : vector<8x32xf32>
    %152 = arith.addf %150, %151 : vector<8x32xf32>
    %153 = math.tanh %152 : vector<8x32xf32>
    %154 = arith.mulf %149, %153 : vector<8x32xf32>
    %cst_25 = arith.constant dense<0.000000e+00> : vector<8x128xf32>
    %155 = tpu.matmul %154, %3, %cst_25 {dimension_numbers = #tpu.dot_dimension_numbers<[1], [0], [0], [1], [0, 0, 1, 1], [], []>} : vector<8x32xf32>, vector<32x128xf32>, vector<8x128xf32> -> vector<8x128xf32>
    %156 = vector.broadcast %4 : vector<1x128xf32> to vector<8x128xf32>
    %157 = arith.addf %155, %156 : vector<8x128xf32>
    %158 = vector.extract_strided_slice %157 {offsets = [0, 0], sizes = [8, 4], strides = [1, 1]} : vector<8x128xf32> to vector<8x4xf32>
    %cst_26 = arith.constant 0.000000e+00 : f32
    %159 = vector.broadcast %cst_26 : f32 to vector<8x60xf32>
    %160 = tpu.concatenate %158, %154, %152, %159 in 1 : vector<8x4xf32>, vector<8x32xf32>, vector<8x32xf32>, vector<8x60xf32> -> vector<8x128xf32>
    %c0_27 = arith.constant 0 : index
    %c0_28 = arith.constant 0 : index
    %161 = vector.load %arg2[%c0_27, %c0_28] : memref<8x128xf32, #tpu.memory_space<vmem>>, vector<8x128xf32>
    tpu.vector_store %arg2[%c0_27, %c0_28], %160 {strides = array<i32>} : memref<8x128xf32, #tpu.memory_space<vmem>>, vector<8x128xf32>,
    return
  }
}

</mosaic_0001>

<bundles_post_ra>
// kernel: forward.1
= control target key start
LH: loop header
LB: loop body
LE: loop exit
PB: predicated region body
PF: predicated region fallthrough
CT: control target
= control target key end

     0   :  { %vm34_vm0 = vcmask 64512   ;;  %v1378_v0 = vmov 0.0|0.0   ;;  %vm1379_vm1 = vmmov 0   ;;  %v1380_v4 = vmov 0.0   ;;  %s1381_s25 = smov 64   ;;  %s1382_s26 = smov 32   ;;  %s1587_s1 = inlined_call_operand.vmem [shape: f32[88,128], index: 1, kind: input, shape index: {}]   ;;  %s1588_s0 = inlined_call_operand.vmem [shape: f32[64,8], index: 0, kind: input, shape index: {}]   ;;  %s1589_s2 = inlined_call_operand.vmem [shape: f32[8,128], index: 2, kind: output, shape index: {}]  }
   0x1   :  { %1253 = vmatprep.subr.bf16.mxu1 %v1378_v0  ;;  %v13_v1 = vld [vmem:[%s1587_s1 + $0x10] sm:$0xff]  ;;  %v14_v2 = vld [vmem:[%s1587_s1 + $0x18] sm:$0xff]  ;;  %v11_v3 = vld [vmem:[%s1587_s1] sm:$0xff]  ;;  %1162 = vmatprep.mubr.msk.f32.mxu1 %vm1379_vm1, %v1380_v4  ;;  %vm164_vm2 = vcmask 261120   ;;  %s1383_s18 = smov 36   ;;  %s1384_s19 = smov 4  }
   0x2   :  { %v1412_v5 = vpack.c.bf16 %v14_v2, %v13_v1  ;;  %1140 = vmatprep.subr.mxu0 %v11_v3  ;;  %v22_v6 = vld [vmem:[%s1588_s0] sm:$0xff]  ;;  %v23_v7 = vld [vmem:[%s1588_s0 + $0x8] sm:$0xff]  ;;  %v24_v46 = vld [vmem:[%s1588_s0 + $0x10] sm:$0xff]  ;;  %vm1049_vm3 = vcmask 31744   ;;  %vm1051_vm4 = vcmask 293888   ;;  %vm1053_vm5 = vcmask 556032  }
   0x3   :  { %v15_v8 = vld [vmem:[%s1587_s1 + $0x20] sm:$0xff]  ;;  %1141 = vmatpush3.msra.mxu0 %v11_v3  ;;  %1142 = vmatprep.mubr.msk.f32.mxu0 %vm34_vm0, %v22_v6  ;;  %v16_v9 = vld [vmem:[%s1587_s1 + $0x28] sm:$0xff]  ;;  %v25_v47 = vld [vmem:[%s1588_s0 + $0x18] sm:$0xff] }
   0x4   :  { %1255 = vmatpush3.bf16.msra.mxu1 %v1412_v5  ;;  %1143 = vmatmul.mubr.msk.f32.vlgmr.msra.gmra.mrb[0].mxu0 %vm34_vm0, %v23_v7  ;;  %v1429_v10 = vpack.c.bf16 %v16_v9, %v15_v8  ;;  %v1449_v12 = vld [vmem:[%s1587_s1 + $0x8] ss:$0 sm:$0xff]  ;;  %v26_v48 = vld [vmem:[%s1588_s0 + $0x20] sm:$0xff]  ;;  %v28_v50 = vld [vmem:[%s1588_s0 + $0x30] sm:$0xff] }
   0x5   :  { %1256 = vmatprep.subr.bf16.mxu1 %v1378_v0  ;;  %1265 = vmatprep.subr.bf16.mxu0 %v1378_v0  ;;  %v27_v49 = vld [vmem:[%s1588_s0 + $0x28] sm:$0xff]  ;;  %v29_v51 = vld [vmem:[%s1588_s0 + $0x38] sm:$0xff] }
   0x6   :  { %1267 = vmatpush3.bf16.msra.mxu0 %v1412_v5  ;;  %1145 = vmatprep.mubr.msk.f32.mxu0 %vm34_vm0, %v24_v46 }
   0x7   :  { %1268 = vmatprep.subr.bf16.mxu0 %v1378_v0 }
   0x8   :  { %1258 = vmatpush3.bf16.msra.mxu1 %v1429_v10  ;;  %1146 = vmatmul.mubr.msk.f32.gmra.mrb[2].mxu0 %vm34_vm0, %v25_v47 }
   0x9   :  { %1259 = vmatprep.subr.bf16.mxu1 %v1378_v0  ;;  %1148 = vmatprep.mubr.msk.f32.mxu0 %vm34_vm0, %v26_v48 }
   0xa   :  { %1270 = vmatpush3.bf16.msra.mxu0 %v1429_v10 }
   0xb   :  { %1163 = vmatmul.mubr.f32.vlgmr.msra.gmra.mrb[0].mxu1 %v1380_v4  ;;  %1277 = vmatprep.subr.bf16.mxu0 %v1378_v0 }
   0xc   :  { %1261 = vmatpush3.bf16.msra.mxu1 %v1412_v5  ;;  %1173 = vmatprep.mubr.msk.f32.mxu1 %vm1379_vm1, %v1380_v4 }
   0xd   :  { %1262 = vmatprep.subr.bf16.mxu1 %v1378_v0  ;;  %1149 = vmatmul.mubr.msk.f32.gmra.mrb[4].mxu0 %vm34_vm0, %v27_v49 }
   0xe   :  { %1151 = vmatprep.mubr.msk.f32.mxu0 %vm34_vm0, %v28_v50 }
  0x10   :  { %1264 = vmatpush3.bf16.msra.mxu1 %v1429_v10 }
  0x11   :  { %1271 = vmatprep.subr.bf16.mxu1 %v1378_v0  ;;  %1152 = vmatmul.mubr.msk.f32.gmra.mrb[6].mxu0 %vm34_vm0, %v29_v51 }
  0x12   :  { %1184 = vmatprep.mubr.msk.f32.mxu0 %vm1379_vm1, %v1380_v4 }
  0xd7   :  { %v1144_v11 = vpop.f32.mrb[0].mxu0 }
  0xd8   :  { %v125_v13 = vpop.f32.mrb[1].mxu0  ;;  %v131_v32 = vadd.f32 %v1144_v11, %v1449_v12 }
  0xd9   :  { %v126_v14 = vadd.f32 %v1449_v12, %v125_v13 }
  0xdb   :  { %v1147_v55 = vpop.f32.mrb[2].mxu0 }
  0xdc   :  { %v135_v56 = vpop.f32.mrb[3].mxu0 }
  0xdd   :  { %v136_v62 = vadd.f32 %v1449_v12, %v135_v56 }
  0xde   :  { %v234_v15 = vpop.f32.mrb[0].mxu1 }
  0xdf   :  { %v238_v16 = vadd.f32 %v234_v15, %v126_v14  ;;  %v1164_v17 = vpop.f32.mrb[1].mxu1 }
  0xe0   :  { %v1494_v57 = vpop.f32.mrb[4].mxu0 }
  0xe1   :  { %1314 = vtanh.f32 %v238_v16  ;;  %v1069_v19 = vmul.f32 -1.442695, %v238_v16  ;;  %v1496_v58 = vpop.f32.mrb[5].mxu0 }
  0xe3   :  { %1316 = vpow2.f32 %v1069_v19 }
  0xe4   :  { %v1498_v59 = vpop.f32.mrb[6].mxu0 }
  0xe5   :  { %v1500_v60 = vpop.f32.mrb[7].mxu0 }
  0xeb   :  { %v1315_v18 = vpop.eup %1314 }
  0xec   :  { %248 = vrot.lane.b32.xlu0 %v1315_v18, %s1381_s25 }
  0xed   :  { %v1317_v20 = vpop.eup %1316 }
  0xee   :  { %v242_v21 = vadd.f32 1.0, %v1317_v20 }
  0xf0   :  { %1318 = vrcp.f32 %v242_v21  ;;  %v141_v21 = vadd.f32 %v1147_v55, %v1449_v12 }
  0xfa   :  { %v1319_v22 = vpop.eup %1318 }
  0xfb   :  { %v246_v25 = vmul.f32 0.0, %v1319_v22 }
 0x15e   :  { %v249_v23 = vpop.permute.xlu0 %248 }
 0x15f   :  { %v251_v24 = vmul.f32 %v1319_v22, %v249_v23 }
 0x161   :  { %253 = vrot.lane.b32.xlu0 %v251_v24, %s1382_s26 }
 0x1d3   :  { %v254_v26 = vpop.permute.xlu0 %253 }
 0x1d4   :  { %v256_v27 = vadd.f32 %v254_v26, %v246_v25 }
 0x1d6   :  { %1320 = vtanh.f32 %v256_v27 }
 0x1e0   :  { %v1321_v28 = vpop.eup %1320 }
 0x1e1   :  { %259 = vrot.lane.b32.xlu1 %v1321_v28, %s1381_s25 }
 0x253   :  { %v260_v29 = vpop.permute.xlu1 %259 }
 0x254   :  { %v262_v30 = vmul.f32 %v1319_v22, %v260_v29 }
 0x256   :  { %264 = vrot.lane.b32.xlu1 %v262_v30, %s1382_s26 }
 0x2c8   :  { %v265_v31 = vpop.permute.xlu1 %264 }
 0x2c9   :  { %1174 = vmatmul.mubr.msk.f32.vlgmr.msra.gmra.mrb[2].mxu1 %vm164_vm2, %v265_v31 }
 0x2ca   :  { %1273 = vmatpush3.bf16.msra.mxu1 %v1412_v5  ;;  %1195 = vmatprep.mubr.msk.f32.mxu1 %vm1379_vm1, %v1380_v4 }
 0x2cb   :  { %1274 = vmatprep.subr.bf16.mxu1 %v1378_v0 }
 0x2ce   :  { %1276 = vmatpush3.bf16.msra.mxu1 %v1429_v10 }
 0x2cf   :  { %1283 = vmatprep.subr.bf16.mxu1 %v1378_v0 }
 0x39c   :  { %v334_v33 = vpop.f32.mrb[2].mxu1 }
 0x39d   :  { %v338_v34 = vadd.f32 %v334_v33, %v131_v32  ;;  %v1175_v35 = vpop.f32.mrb[3].mxu1 }
 0x39f   :  { %1322 = vtanh.f32 %v338_v34  ;;  %v1071_v37 = vmul.f32 -1.442695, %v338_v34 }
 0x3a1   :  { %1324 = vpow2.f32 %v1071_v37 }
 0x3a9   :  { %v1323_v36 = vpop.eup %1322 }
 0x3aa   :  { %348 = vrot.lane.b32.xlu0 %v1323_v36, %s1381_s25 }
 0x3ab   :  { %v1325_v38 = vpop.eup %1324 }
 0x3ac   :  { %v342_v39 = vadd.f32 1.0, %v1325_v38 }
 0x3ae   :  { %1326 = vrcp.f32 %v342_v39  ;;  %v146_v39 = vadd.f32 %v1449_v12, %v1496_v58  ;;  %v151_v58 = vadd.f32 %v1494_v57, %v1449_v12 }
 0x3b8   :  { %v1327_v40 = vpop.eup %1326 }
 0x3b9   :  { %v346_v43 = vmul.f32 %v1327_v40, %v256_v27 }
 0x41c   :  { %v349_v41 = vpop.permute.xlu0 %348 }
 0x41d   :  { %v351_v42 = vmul.f32 %v1327_v40, %v349_v41 }
 0x41f   :  { %353 = vrot.lane.b32.xlu1 %v351_v42, %s1382_s26 }
 0x491   :  { %v354_v44 = vpop.permute.xlu1 %353 }
 0x492   :  { %v356_v45 = vadd.f32 %v354_v44, %v346_v43 }
 0x494   :  { %1328 = vtanh.f32 %v356_v45 }
 0x49e   :  { %v1329_v52 = vpop.eup %1328 }
 0x49f   :  { %359 = vrot.lane.b32.xlu0 %v1329_v52, %s1381_s25 }
 0x511   :  { %v360_v53 = vpop.permute.xlu0 %359 }
 0x512   :  { %v362_v54 = vmul.f32 %v1327_v40, %v360_v53 }
 0x514   :  { %364 = vrot.lane.b32.xlu1 %v362_v54, %s1382_s26 }
 0x586   :  { %v365_v61 = vpop.permute.xlu1 %364 }
 0x587   :  { %1185 = vmatmul.mubr.msk.f32.vlgmr.msra.gmra.mrb[8].mxu0 %vm164_vm2, %v365_v61 }
 0x588   :  { %1279 = vmatpush3.bf16.msra.mxu0 %v1412_v5  ;;  %1206 = vmatprep.mubr.msk.f32.mxu0 %vm1379_vm1, %v1380_v4 }
 0x589   :  { %1280 = vmatprep.subr.bf16.mxu0 %v1378_v0 }
 0x58c   :  { %1282 = vmatpush3.bf16.msra.mxu0 %v1429_v10 }
 0x58d   :  { %1289 = vmatprep.subr.bf16.mxu0 %v1378_v0 }
 0x65a   :  { %v434_v63 = vpop.f32.mrb[8].mxu0 }
 0x65b   :  { %v438_v1 = vadd.f32 %v434_v63, %v136_v62  ;;  %v1186_v2 = vpop.f32.mrb[9].mxu0 }
 0x65d   :  { %1330 = vtanh.f32 %v438_v1  ;;  %v1073_v6 = vmul.f32 -1.442695, %v438_v1 }
 0x65f   :  { %1332 = vpow2.f32 %v1073_v6 }
 0x667   :  { %v1331_v3 = vpop.eup %1330 }
 0x668   :  { %448 = vrot.lane.b32.xlu0 %v1331_v3, %s1381_s25 }
 0x669   :  { %v1333_v7 = vpop.eup %1332 }
 0x66a   :  { %v442_v8 = vadd.f32 1.0, %v1333_v7 }
 0x66c   :  { %1334 = vrcp.f32 %v442_v8 }
 0x676   :  { %v1335_v9 = vpop.eup %1334 }
 0x677   :  { %v446_v14 = vmul.f32 %v1335_v9, %v356_v45 }
 0x6da   :  { %v449_v11 = vpop.permute.xlu0 %448 }
 0x6db   :  { %v451_v13 = vmul.f32 %v1335_v9, %v449_v11 }
 0x6dd   :  { %453 = vrot.lane.b32.xlu1 %v451_v13, %s1382_s26 }
 0x74f   :  { %v454_v15 = vpop.permute.xlu1 %453 }
 0x750   :  { %v456_v16 = vadd.f32 %v454_v15, %v446_v14 }
 0x752   :  { %1336 = vtanh.f32 %v456_v16 }
 0x75c   :  { %v1337_v17 = vpop.eup %1336 }
 0x75d   :  { %459 = vrot.lane.b32.xlu0 %v1337_v17, %s1381_s25 }
 0x7cf   :  { %v460_v18 = vpop.permute.xlu0 %459 }
 0x7d0   :  { %v462_v19 = vmul.f32 %v1335_v9, %v460_v18 }
 0x7d2   :  { %464 = vrot.lane.b32.xlu1 %v462_v19, %s1382_s26 }
 0x844   :  { %v465_v20 = vpop.permute.xlu1 %464 }
 0x845   :  { %1196 = vmatmul.mubr.msk.f32.vlgmr.msra.gmra.mrb[4].mxu1 %vm164_vm2, %v465_v20 }
 0x846   :  { %1285 = vmatpush3.bf16.msra.mxu1 %v1412_v5  ;;  %1217 = vmatprep.mubr.msk.f32.mxu1 %vm1379_vm1, %v1380_v4 }
 0x847   :  { %1286 = vmatprep.subr.bf16.mxu1 %v1378_v0 }
 0x84a   :  { %1288 = vmatpush3.bf16.msra.mxu1 %v1429_v10 }
 0x84b   :  { %1295 = vmatprep.subr.bf16.mxu1 %v1378_v0 }
 0x918   :  { %v534_v22 = vpop.f32.mrb[4].mxu1 }
 0x919   :  { %v538_v23 = vadd.f32 %v534_v22, %v141_v21  ;;  %v1197_v24 = vpop.f32.mrb[5].mxu1 }
 0x91b   :  { %1338 = vtanh.f32 %v538_v23  ;;  %v1075_v26 = vmul.f32 -1.442695, %v538_v23 }
 0x91d   :  { %1340 = vpow2.f32 %v1075_v26 }
 0x925   :  { %v1339_v25 = vpop.eup %1338 }
 0x926   :  { %548 = vrot.lane.b32.xlu0 %v1339_v25, %s1381_s25 }
 0x927   :  { %v1341_v27 = vpop.eup %1340 }
 0x928   :  { %v542_v28 = vadd.f32 1.0, %v1341_v27 }
 0x92a   :  { %1342 = vrcp.f32 %v542_v28 }
 0x934   :  { %v1343_v29 = vpop.eup %1342 }
 0x935   :  { %v546_v32 = vmul.f32 %v1343_v29, %v456_v16  ;;  %v156_v16 = vadd.f32 %v1449_v12, %v1500_v60 }
 0x998   :  { %v549_v30 = vpop.permute.xlu0 %548 }
 0x999   :  { %v551_v31 = vmul.f32 %v1343_v29, %v549_v30 }
 0x99b   :  { %553 = vrot.lane.b32.xlu1 %v551_v31, %s1382_s26 }
 0xa0d   :  { %v554_v33 = vpop.permute.xlu1 %553 }
 0xa0e   :  { %v556_v34 = vadd.f32 %v554_v33, %v546_v32  ;;  %v161_v32 = vadd.f32 %v1498_v59, %v1449_v12  ;;  %v17_v59 = vld [vmem:[%s1587_s1 + $0x30] sm:$0xff] }
 0xa10   :  { %1344 = vtanh.f32 %v556_v34 }
 0xa1a   :  { %v1345_v35 = vpop.eup %1344 }
 0xa1b   :  { %559 = vrot.lane.b32.xlu0 %v1345_v35, %s1381_s25 }
 0xa8d   :  { %v560_v36 = vpop.permute.xlu0 %559 }
 0xa8e   :  { %v562_v37 = vmul.f32 %v1343_v29, %v560_v36 }
 0xa90   :  { %564 = vrot.lane.b32.xlu1 %v562_v37, %s1382_s26 }
 0xb02   :  { %v565_v38 = vpop.permute.xlu1 %564 }
 0xb03   :  { %1207 = vmatmul.mubr.msk.f32.vlgmr.msra.gmra.mrb[10].mxu0 %vm164_vm2, %v565_v38 }
 0xb04   :  { %1291 = vmatpush3.bf16.msra.mxu0 %v1412_v5  ;;  %1228 = vmatprep.mubr.msk.f32.mxu0 %vm1379_vm1, %v1380_v4 }
 0xb05   :  { %1292 = vmatprep.subr.bf16.mxu0 %v1378_v0 }
 0xb08   :  { %1294 = vmatpush3.bf16.msra.mxu0 %v1429_v10 }
 0xb09   :  { %1301 = vmatprep.subr.bf16.mxu0 %v1378_v0 }
 0xbd6   :  { %v634_v40 = vpop.f32.mrb[10].mxu0 }
 0xbd7   :  { %v638_v41 = vadd.f32 %v634_v40, %v146_v39  ;;  %v1208_v42 = vpop.f32.mrb[11].mxu0 }
 0xbd9   :  { %1346 = vtanh.f32 %v638_v41  ;;  %v1077_v44 = vmul.f32 -1.442695, %v638_v41 }
 0xbdb   :  { %1348 = vpow2.f32 %v1077_v44 }
 0xbe3   :  { %v1347_v43 = vpop.eup %1346 }
 0xbe4   :  { %648 = vrot.lane.b32.xlu0 %v1347_v43, %s1381_s25 }
 0xbe5   :  { %v1349_v45 = vpop.eup %1348 }
 0xbe6   :  { %v642_v46 = vadd.f32 1.0, %v1349_v45  ;;  %v18_v45 = vld [vmem:[%s1587_s1 + $0x38] sm:$0xff] }
 0xbe8   :  { %1350 = vrcp.f32 %v642_v46  ;;  %v19_v46 = vld [vmem:[%s1587_s1 + $0x40] sm:$0xff] }
 0xbf2   :  { %v1351_v47 = vpop.eup %1350 }
 0xbf3   :  { %v646_v50 = vmul.f32 %v1351_v47, %v556_v34 }
 0xc56   :  { %v649_v48 = vpop.permute.xlu0 %648 }
 0xc57   :  { %v651_v49 = vmul.f32 %v1351_v47, %v649_v48  ;;  %v20_v48 = vld [vmem:[%s1587_s1 + $0x48] sm:$0xff] }
 0xc59   :  { %653 = vrot.lane.b32.xlu1 %v651_v49, %s1382_s26  ;;  %v1305_v49 = vpack.c.bf16 %v20_v48, %v19_v46 }
 0xccb   :  { %v654_v51 = vpop.permute.xlu1 %653 }
 0xccc   :  { %v656_v52 = vadd.f32 %v654_v51, %v646_v50 }
 0xcce   :  { %1352 = vtanh.f32 %v656_v52 }
 0xcd8   :  { %v1353_v53 = vpop.eup %1352 }
 0xcd9   :  { %659 = vrot.lane.b32.xlu0 %v1353_v53, %s1381_s25 }
 0xd4b   :  { %v660_v54 = vpop.permute.xlu0 %659 }
 0xd4c   :  { %v662_v55 = vmul.f32 %v1351_v47, %v660_v54  ;;  %v1302_v47 = vpack.c.bf16 %v18_v45, %v17_v59  ;;  %v1084_v54 = vld [vmem:[%s1587_s1 + $0x50] ss:$0 sm:$0xff] }
 0xd4e   :  { %664 = vrot.lane.b32.xlu1 %v662_v55, %s1382_s26 }
 0xdc0   :  { %v665_v56 = vpop.permute.xlu1 %664 }
 0xdc1   :  { %1218 = vmatmul.mubr.msk.f32.vlgmr.msra.gmra.mrb[6].mxu1 %vm164_vm2, %v665_v56 }
 0xdc2   :  { %1297 = vmatpush3.bf16.msra.mxu1 %v1412_v5  ;;  %1239 = vmatprep.mubr.msk.f32.mxu1 %vm1379_vm1, %v1380_v4 }
 0xdc3   :  { %1298 = vmatprep.subr.bf16.mxu1 %v1378_v0 }
 0xdc6   :  { %1300 = vmatpush3.bf16.msra.mxu1 %v1429_v10 }
 0xe94   :  { %v734_v61 = vpop.f32.mrb[6].mxu1 }
 0xe95   :  { %v738_v62 = vadd.f32 %v734_v61, %v151_v58  ;;  %v1219_v63 = vpop.f32.mrb[7].mxu1 }
 0xe97   :  { %1354 = vtanh.f32 %v738_v62  ;;  %v1079_v2 = vmul.f32 -1.442695, %v738_v62 }
 0xe99   :  { %1356 = vpow2.f32 %v1079_v2 }
 0xea1   :  { %v1355_v1 = vpop.eup %1354 }
 0xea2   :  { %748 = vrot.lane.b32.xlu0 %v1355_v1, %s1381_s25 }
 0xea3   :  { %v1357_v5 = vpop.eup %1356 }
 0xea4   :  { %v742_v3 = vadd.f32 1.0, %v1357_v5 }
 0xea6   :  { %1358 = vrcp.f32 %v742_v3 }
 0xeb0   :  { %v1359_v6 = vpop.eup %1358 }
 0xeb1   :  { %v746_v10 = vmul.f32 %v1359_v6, %v656_v52 }
 0xf14   :  { %v749_v7 = vpop.permute.xlu0 %748 }
 0xf15   :  { %v751_v8 = vmul.f32 %v1359_v6, %v749_v7 }
 0xf17   :  { %753 = vrot.lane.b32.xlu1 %v751_v8, %s1382_s26 }
 0xf89   :  { %v754_v9 = vpop.permute.xlu1 %753 }
 0xf8a   :  { %v756_v57 = vadd.f32 %v754_v9, %v746_v10 }
 0xf8c   :  { %1360 = vtanh.f32 %v756_v57 }
 0xf96   :  { %v1361_v11 = vpop.eup %1360 }
 0xf97   :  { %759 = vrot.lane.b32.xlu0 %v1361_v11, %s1381_s25 }
0x1009   :  { %v760_v13 = vpop.permute.xlu0 %759 }
0x100a   :  { %v762_v14 = vmul.f32 %v1359_v6, %v760_v13 }
0x100c   :  { %764 = vrot.lane.b32.xlu1 %v762_v14, %s1382_s26 }
0x107e   :  { %v765_v15 = vpop.permute.xlu1 %764 }
0x107f   :  { %1229 = vmatmul.mubr.msk.f32.vlgmr.msra.gmra.mrb[12].mxu0 %vm164_vm2, %v765_v15 }
0x1080   :  { %1250 = vmatprep.mubr.msk.f32.mxu0 %vm1379_vm1, %v1380_v4  ;;  %1303 = vmatpush3.bf16.msra.mxu0 %v1302_v47 }
0x1081   :  { %1304 = vmatprep.subr.bf16.mxu0 %v1378_v0 }
0x1084   :  { %1306 = vmatpush3.bf16.msra.mxu0 %v1305_v49 }
0x1152   :  { %v834_v17 = vpop.f32.mrb[12].mxu0 }
0x1153   :  { %v838_v18 = vadd.f32 %v834_v17, %v156_v16  ;;  %v1230_v19 = vpop.f32.mrb[13].mxu0 }
0x1155   :  { %1362 = vtanh.f32 %v838_v18  ;;  %v1081_v21 = vmul.f32 -1.442695, %v838_v18 }
0x1157   :  { %1364 = vpow2.f32 %v1081_v21 }
0x115f   :  { %v1363_v20 = vpop.eup %1362 }
0x1160   :  { %848 = vrot.lane.b32.xlu0 %v1363_v20, %s1381_s25 }
0x1161   :  { %v1365_v22 = vpop.eup %1364 }
0x1162   :  { %v842_v23 = vadd.f32 1.0, %v1365_v22 }
0x1164   :  { %1366 = vrcp.f32 %v842_v23 }
0x116e   :  { %v1367_v24 = vpop.eup %1366 }
0x116f   :  { %v846_v4 = vmul.f32 %v1367_v24, %v756_v57 }
0x11d2   :  { %v849_v25 = vpop.permute.xlu0 %848 }
0x11d3   :  { %v851_v26 = vmul.f32 %v1367_v24, %v849_v25 }
0x11d5   :  { %853 = vrot.lane.b32.xlu1 %v851_v26, %s1382_s26 }
0x1247   :  { %v854_v27 = vpop.permute.xlu1 %853 }
0x1248   :  { %v856_v60 = vadd.f32 %v854_v27, %v846_v4 }
0x124a   :  { %1368 = vtanh.f32 %v856_v60 }
0x1254   :  { %v1369_v28 = vpop.eup %1368 }
0x1255   :  { %859 = vrot.lane.b32.xlu0 %v1369_v28, %s1381_s25 }
0x12c7   :  { %v860_v29 = vpop.permute.xlu0 %859 }
0x12c8   :  { %v862_v30 = vmul.f32 %v1367_v24, %v860_v29 }
0x12ca   :  { %864 = vrot.lane.b32.xlu1 %v862_v30, %s1382_s26 }
0x133c   :  { %v865_v31 = vpop.permute.xlu1 %864 }
0x133d   :  { %1240 = vmatmul.mubr.msk.f32.vlgmr.msra.gmra.mrb[8].mxu1 %vm164_vm2, %v865_v31 }
0x1410   :  { %v934_v33 = vpop.f32.mrb[8].mxu1 }
0x1411   :  { %v938_v34 = vadd.f32 %v934_v33, %v161_v32  ;;  %v1241_v35 = vpop.f32.mrb[9].mxu1 }
0x1413   :  { %1370 = vtanh.f32 %v938_v34  ;;  %v1083_v37 = vmul.f32 -1.442695, %v938_v34 }
0x1415   :  { %1372 = vpow2.f32 %v1083_v37 }
0x141d   :  { %v1371_v36 = vpop.eup %1370 }
0x141e   :  { %948 = vrot.lane.b32.xlu0 %v1371_v36, %s1381_s25 }
0x141f   :  { %v1373_v38 = vpop.eup %1372 }
0x1420   :  { %v942_v39 = vadd.f32 1.0, %v1373_v38 }
0x1422   :  { %1374 = vrcp.f32 %v942_v39 }
0x142c   :  { %v1375_v40 = vpop.eup %1374 }
0x142d   :  { %v946_v43 = vmul.f32 %v1375_v40, %v856_v60 }
0x1490   :  { %v949_v41 = vpop.permute.xlu0 %948 }
0x1491   :  { %v951_v42 = vmul.f32 %v1375_v40, %v949_v41 }
0x1493   :  { %953 = vrot.lane.b32.xlu1 %v951_v42, %s1382_s26 }
0x1505   :  { %v954_v44 = vpop.permute.xlu1 %953 }
0x1506   :  { %v956_v12 = vadd.f32 %v954_v44, %v946_v43 }
0x1508   :  { %1376 = vtanh.f32 %v956_v12 }
0x1512   :  { %v1377_v50 = vpop.eup %1376 }
0x1513   :  { %959 = vrot.lane.b32.xlu0 %v1377_v50, %s1381_s25 }
0x1585   :  { %v960_v51 = vpop.permute.xlu0 %959 }
0x1586   :  { %v962_v52 = vmul.f32 %v1375_v40, %v960_v51 }
0x1588   :  { %1042 = vrot.lane.b32.xlu0 %v962_v52, %s1383_s18  ;;  %968 = vrot.lane.b32.xlu1 %v962_v52, %s1382_s26 }
0x158c   :  { %1046 = vrot.lane.b32.xlu1 %v956_v12, %s1384_s19 }
0x15fa   :  { %v969_v53 = vpop.permute.xlu1 %968  ;;  %v1043_v58 = vpop.permute.xlu0 %1042 }
0x15fb   :  { %1251 = vmatmul.mubr.msk.f32.vlgmr.msra.gmra.mrb[14].mxu0 %vm164_vm2, %v969_v53 }
0x15fe   :  { %v1047_v61 = vpop.permute.xlu1 %1046 }
0x16ce   :  { %v1038_v0 = vpop.f32.mrb[14].mxu0 }
0x16cf   :  { %v1039_v55 = vadd.f32 %v1084_v54, %v1038_v0  ;;  %v1252_v56 = vpop.f32.mrb[15].mxu0 }
0x16d1   :  { %v1050_v62 = vsel %vm1049_vm3, %v1039_v55, %v1043_v58 }
0x16d2   :  { %v1052_v63 = vsel %vm1051_vm4, %v1050_v62, %v1047_v61 }
0x16d3   :  { %v1054_v1 = vsel %vm1053_vm5, %v1052_v63, 0.0 }
0x16d4   :  { %1055 = vst [vmem:[%s1589_s2] sm:$0xff] %v1054_v1 }

</bundles_post_ra>
